<compile_context>
chip_gen: v7x
topology: tpu7x:2x2x1
jax: 0.10.0
libtpu: 0.0.40
codegen_flags: <defaults>
</compile_context>

<pallas_src>
import numpy as np
import jax
import jax.numpy as jnp
from jax.experimental import pallas as pl
from jax.experimental.pallas import tpu as pltpu


# --------------------------------------------------------------------- LSTM --
def lstm_step_kernel(x_ref, wih_ref, whh_ref, b_ref, out_ref, h_sc, c_sc):
    t = pl.program_id(0)

    @pl.when(t == 0)
    def _init():
        h_sc[...] = jnp.zeros_like(h_sc)
        c_sc[...] = jnp.zeros_like(c_sc)

    x_t = x_ref[0]                        # (B, E)
    h_prev = h_sc[...]                    # (B, H)
    gates = (jnp.dot(x_t, wih_ref[...], preferred_element_type=jnp.float32)
             + jnp.dot(h_prev, whh_ref[...], preferred_element_type=jnp.float32)
             + b_ref[...])                # (B, 4H)

    hd = h_sc.shape[-1]

    def _sig(v):
        return 1.0 / (1.0 + jnp.exp(-v))

    i_g = _sig(gates[:, 0 * hd:1 * hd])
    f_g = _sig(gates[:, 1 * hd:2 * hd])
    g_g = jnp.tanh(gates[:, 2 * hd:3 * hd])
    o_g = _sig(gates[:, 3 * hd:4 * hd])

    c_new = f_g * c_sc[...] + i_g * g_g
    h_new = o_g * jnp.tanh(c_new)
    c_sc[...] = c_new
    h_sc[...] = h_new
    out_ref[0] = h_new.astype(out_ref.dtype)


def lstm_forward(x_bse, wih_t, whh_t, bias_2d):
    """x_bse: (B,S,E) f32 (prefix-masked). wih_t:(E,4H) whh_t:(H,4H) bias:(1,4H)."""
    B, S, E = x_bse.shape
    H4 = wih_t.shape[1]
    H = H4 // 4
    x_sbe = jnp.transpose(x_bse, (1, 0, 2))          # time-major -> full-tile blocks
    out_sbh = pl.pallas_call(
        lstm_step_kernel,
        out_shape=jax.ShapeDtypeStruct((S, B, H), jnp.float32),
        grid_spec=pltpu.PrefetchScalarGridSpec(
            num_scalar_prefetch=0,
            grid=(S,),
            in_specs=[
                pl.BlockSpec((1, B, E), lambda t: (t, 0, 0)),   # x_t
                pl.BlockSpec((E, H4), lambda t: (0, 0)),        # W_ih^T (resident)
                pl.BlockSpec((H, H4), lambda t: (0, 0)),        # W_hh^T (resident)
                pl.BlockSpec((1, H4), lambda t: (0, 0)),        # b_ih + b_hh
            ],
            out_specs=pl.BlockSpec((1, B, H), lambda t: (t, 0, 0)),
            scratch_shapes=[pltpu.VMEM((B, H), jnp.float32),    # h carry
                            pltpu.VMEM((B, H), jnp.float32)],   # c carry
        ),
        compiler_params=pltpu.CompilerParams(
            dimension_semantics=("arbitrary",)),                # sequential recurrence
    )(x_sbe, wih_t, whh_t, bias_2d)
    return jnp.transpose(out_sbh, (1, 0, 2))                    # (B, S, H)


# ---------------------------------------------------------------- pair loss --
_NEG = -1e30


def pair_loss_kernel(lstm_ref, his_ref, len_ref, wa_ref, wc_ref, b_ref,
                     sum_ref, cnt_ref):
    bi = pl.program_id(0)

    @pl.when(bi == 0)
    def _init():
        sum_ref[...] = jnp.zeros_like(sum_ref)
        cnt_ref[...] = jnp.zeros_like(cnt_ref)

    lstm = lstm_ref[...]                  # (Bt, S, H)
    his = his_ref[...]                    # (Bt, S, E)
    lens = len_ref[...]                   # (Bt, 1) int32

    # con_fc(concat(lstm_j, his_k)) = lstm_j . w_a + his_k . w_c + bias
    a = jnp.sum(lstm * wa_ref[...], axis=-1)            # (Bt, S)
    c = jnp.sum(his * wc_ref[...], axis=-1)             # (Bt, S)

    Bt, S = a.shape
    scores = a[:, :, None] + c[:, None, :] + b_ref[...]  # (Bt, S, S)

    j_idx = jax.lax.broadcasted_iota(jnp.int32, (Bt, S, S), 1)
    k_idx = jax.lax.broadcasted_iota(jnp.int32, (Bt, S, S), 2)
    L = lens[:, :, None]                                  # (Bt, 1, 1)
    valid_k = (k_idx > j_idx) & (k_idx < L)                # candidate turns for row j
    jj = jax.lax.broadcasted_iota(jnp.int32, (Bt, S), 1)
    valid_j = jj < (lens - 1)                              # rows with >=1 candidate

    masked = jnp.where(valid_k, scores, _NEG)
    m = jnp.max(masked, axis=-1)                           # (Bt, S)
    safe_m = jnp.where(valid_j, m, 0.0)
    p = jnp.exp(masked - safe_m[:, :, None])               # ~0 at invalid k
    sumexp = jnp.maximum(jnp.sum(p, axis=-1), 1e-30)
    lse = safe_m + jnp.log(sumexp)

    # positive-class score: k == j+1
    next_mask = (k_idx == j_idx + 1) & valid_k
    score_pos = jnp.sum(jnp.where(next_mask, scores, 0.0), axis=-1)

    loss_rows = jnp.where(valid_j, lse - score_pos, 0.0)
    sum_ref[...] += jnp.sum(loss_rows)
    cnt_ref[...] += jnp.sum(valid_j.astype(jnp.float32))


def dli_pair_loss(lstm_out, his, lengths_2d, w_a, w_c, b_fc, *, bt=8):
    B, S, H = lstm_out.shape
    E = his.shape[-1]
    assert B % bt == 0
    loss_sum, cnt = pl.pallas_call(
        pair_loss_kernel,
        out_shape=(jax.ShapeDtypeStruct((1, 1), jnp.float32),
                   jax.ShapeDtypeStruct((1, 1), jnp.float32)),
        grid_spec=pltpu.PrefetchScalarGridSpec(
            num_scalar_prefetch=0,
            grid=(B // bt,),
            in_specs=[
                pl.BlockSpec((bt, S, H), lambda b: (b, 0, 0)),   # lstm outputs
                pl.BlockSpec((bt, S, E), lambda b: (b, 0, 0)),   # his_turn_states
                pl.BlockSpec((bt, 1), lambda b: (b, 0)),         # turn lengths
                pl.BlockSpec((1, 1, H), lambda b: (0, 0, 0)),    # con_fc w (lstm half)
                pl.BlockSpec((1, 1, E), lambda b: (0, 0, 0)),    # con_fc w (enc half)
                pl.BlockSpec((1, 1), lambda b: (0, 0)),          # con_fc bias
            ],
            out_specs=(pl.BlockSpec((1, 1), lambda b: (0, 0)),
                       pl.BlockSpec((1, 1), lambda b: (0, 0))),
        ),
        compiler_params=pltpu.CompilerParams(
            dimension_semantics=("arbitrary",)),   # accumulates across batch tiles
    )(lstm_out, his, lengths_2d, w_a, w_c, b_fc)
    return loss_sum[0, 0] / jnp.maximum(cnt[0, 0], 1.0)


# ---------------------------------------------------------------- top level --
def dli_loss_full(encoder_output, mask, lstm_params, fc_params):
    """Forward of DLI_loss_full. Returns a scalar loss."""
    wih, whh, bih, bhh = lstm_params      # torch shapes (4H,E) (4H,H) (4H,) (4H,)
    w_fc, b_fc = fc_params                # (1, H+E), (1,)
    B, S, E = encoder_output.shape
    H = whh.shape[1]

    lengths = jnp.sum(mask.astype(jnp.int32), axis=1)                 # (B,)
    prefix = (jnp.arange(S, dtype=jnp.int32)[None, :] < lengths[:, None])
    his = encoder_output * prefix[:, :, None].astype(encoder_output.dtype)

    # Pad batch to a sublane multiple; padded rows have length 0 -> no pairs.
    Bp = ((B + 7) // 8) * 8
    pad = Bp - B
    his_p = jnp.pad(his, ((0, pad), (0, 0), (0, 0)))
    len_p = jnp.pad(lengths, (0, pad)).reshape(Bp, 1).astype(jnp.int32)

    lstm_out = lstm_forward(his_p, jnp.transpose(wih), jnp.transpose(whh),
                            (bih + bhh)[None, :])

    w_a = w_fc[0, :H].reshape(1, 1, H)     # multiplies the LSTM-output half
    w_c = w_fc[0, H:].reshape(1, 1, E)     # multiplies the his_turn_states half
    b2 = b_fc.reshape(1, 1).astype(jnp.float32)

    # The his_max_len == 1 branch of the module is subsumed: zero valid pairs
    # gives count == 0 and a 0.0 loss.
    return dli_pair_loss(lstm_out, his_p, len_p, w_a, w_c, b2, bt=8)


# --------------------------------------------------------------- reference ---
def _np_sigmoid(x):
    return 1.0 / (1.0 + np.exp(-x))


def reference_dli_loss(enc, mask, lstm_params, fc_params):
    wih, whh, bih, bhh = [np.asarray(p, np.float64) for p in lstm_params]
    w_fc, b_fc = [np.asarray(p, np.float64) for p in fc_params]
    enc = np.asarray(enc, np.float64)
    mask = np.asarray(mask)
    B, S, E = enc.shape
    H = whh.shape[1]
    lengths = mask.sum(1).astype(int)

    his = np.zeros_like(enc)
    for i in range(B):
        his[i, :lengths[i]] = enc[i, :lengths[i]]

    out = np.zeros((B, S, H))
    for i in range(B):
        h = np.zeros(H); c = np.zeros(H)
        for t in range(S):
            g = wih @ his[i, t] + whh @ h + bih + bhh
            i_g = _np_sigmoid(g[:H]); f_g = _np_sigmoid(g[H:2 * H])
            g_g = np.tanh(g[2 * H:3 * H]); o_g = _np_sigmoid(g[3 * H:])
            c = f_g * c + i_g * g_g
            h = o_g * np.tanh(c)
            out[i, t] = h

    w = w_fc[0]; b = float(b_fc[0])
    losses = []
    for i in range(B):
        L = int(lengths[i])
        for j in range(L):
            scores = [float(np.concatenate([out[i, j], his[i, k]]) @ w + b)
                      for k in range(j + 1, L)]
            if scores:
                s = np.array(scores)
                m = s.max()
                lse = m + np.log(np.exp(s - m).sum())
                losses.append(lse - s[0])            # CE with target index 0
    return float(np.mean(losses)) if losses else 0.0


if __name__ == "__main__":
    B, S, E, H = 2, 8, 32, 32   # batch, max turns, enc_dim, lstm_hid

    key = jax.random.PRNGKey(0)
    k_enc, k_wih, k_whh, k_bih, k_bhh, k_wfc, k_bfc = jax.random.split(key, 7)

    encoder_output = jax.random.normal(k_enc, (B, S, E), jnp.float32)
    turn_lengths = jnp.array([8, 5], jnp.int32)
    mask = (jnp.arange(S)[None, :] < turn_lengths[:, None]).astype(jnp.float32)

    sc = 0.2
    wih = sc * jax.random.normal(k_wih, (4 * H, E), jnp.float32)   # weight_ih_l0
    whh = sc * jax.random.normal(k_whh, (4 * H, H), jnp.float32)   # weight_hh_l0
    bih = sc * jax.random.normal(k_bih, (4 * H,), jnp.float32)
    bhh = sc * jax.random.normal(k_bhh, (4 * H,), jnp.float32)
    w_fc = sc * jax.random.normal(k_wfc, (1, H + E), jnp.float32)  # con_fc.weight
    b_fc = sc * jax.random.normal(k_bfc, (1,), jnp.float32)        # con_fc.bias

    loss = jax.jit(dli_loss_full)(encoder_output, mask,
                                  (wih, whh, bih, bhh), (w_fc, b_fc))
    loss = jax.block_until_ready(loss)

    ref = reference_dli_loss(encoder_output, mask,
                             (wih, whh, bih, bhh), (w_fc, b_fc))
    assert abs(float(loss) - ref) < 1e-3, f"mismatch: kernel={float(loss)} ref={ref}"

    print("KERNEL_OK")
</pallas_src>

<mosaic_0001>
module attributes {stable_mosaic.version = 11 : i64} {
  func.func @lstm_step_kernel(%arg0: i32, %arg1: memref<1x8x32xf32, #tpu.memory_space<vmem>>, %arg2: memref<32x128xf32, #tpu.memory_space<vmem>>, %arg3: memref<32x128xf32, #tpu.memory_space<vmem>>, %arg4: memref<1x128xf32, #tpu.memory_space<vmem>>, %arg5: memref<1x8x32xf32, #tpu.memory_space<vmem>>, %arg6: memref<8x32xf32, #tpu.memory_space<vmem>>, %arg7: memref<8x32xf32, #tpu.memory_space<vmem>>) attributes {dimension_semantics = [#tpu.dimension_semantics<arbitrary>], iteration_bounds = array<i64: 8>, scalar_prefetch = 0 : i64, scratch_operands = 2 : i64, tpu.core_type = #tpu.core_type<tc>, window_params = [{transform_indices = @transform_0, window_bounds = array<i64: 1, 8, 32>}, {pipeline_mode = #tpu.pipeline_mode<synchronous>, transform_indices = @transform_1, window_bounds = array<i64: 32, 128>}, {pipeline_mode = #tpu.pipeline_mode<synchronous>, transform_indices = @transform_2, window_bounds = array<i64: 32, 128>}, {pipeline_mode = #tpu.pipeline_mode<synchronous>, transform_indices = @transform_3, window_bounds = array<i64: 1, 128>}, {transform_indices = @transform_4, window_bounds = array<i64: 1, 8, 32>}]} {
    %c0_i32 = arith.constant 0 : i32
    %0 = arith.cmpi eq, %arg0, %c0_i32 : i32
    %1 = arith.extui %0 : i1 to i32
    %c0_i32_0 = arith.constant 0 : i32
    %2 = arith.cmpi ne, %1, %c0_i32_0 : i32
    scf.if %2 {
      %cst_30 = arith.constant 0.000000e+00 : f32
      %51 = vector.broadcast %cst_30 : f32 to vector<8x32xf32>
      %c0_31 = arith.constant 0 : index
      %c0_32 = arith.constant 0 : index
      %52 = vector.load %arg6[%c0_31, %c0_32] : memref<8x32xf32, #tpu.memory_space<vmem>>, vector<8x32xf32>
      tpu.vector_store %arg6[%c0_31, %c0_32], %51 {strides = array<i32>} : memref<8x32xf32, #tpu.memory_space<vmem>>, vector<8x32xf32>,
      %cst_33 = arith.constant 0.000000e+00 : f32
      %53 = vector.broadcast %cst_33 : f32 to vector<8x32xf32>
      %c0_34 = arith.constant 0 : index
      %c0_35 = arith.constant 0 : index
      %54 = vector.load %arg7[%c0_34, %c0_35] : memref<8x32xf32, #tpu.memory_space<vmem>>, vector<8x32xf32>
      tpu.vector_store %arg7[%c0_34, %c0_35], %53 {strides = array<i32>} : memref<8x32xf32, #tpu.memory_space<vmem>>, vector<8x32xf32>,
    } else {
    }
    %c0 = arith.constant 0 : index
    %c0_1 = arith.constant 0 : index
    %c0_2 = arith.constant 0 : index
    %3 = vector.load %arg1[%c0, %c0_1, %c0_2] : memref<1x8x32xf32, #tpu.memory_space<vmem>>, vector<1x8x32xf32>
    %4 = vector.shape_cast %3 : vector<1x8x32xf32> to vector<8x32xf32>
    %c0_3 = arith.constant 0 : index
    %c0_4 = arith.constant 0 : index
    %5 = vector.load %arg6[%c0_3, %c0_4] : memref<8x32xf32, #tpu.memory_space<vmem>>, vector<8x32xf32>
    %c0_5 = arith.constant 0 : index
    %c0_6 = arith.constant 0 : index
    %6 = vector.load %arg2[%c0_5, %c0_6] : memref<32x128xf32, #tpu.memory_space<vmem>>, vector<32x128xf32>
    %cst = arith.constant dense<0.000000e+00> : vector<8x128xf32>
    %7 = tpu.matmul %4, %6, %cst {dimension_numbers = #tpu.dot_dimension_numbers<[1], [0], [0], [1], [0, 0, 1, 1], [], []>} : vector<8x32xf32>, vector<32x128xf32>, vector<8x128xf32> -> vector<8x128xf32>
    %c0_7 = arith.constant 0 : index
    %c0_8 = arith.constant 0 : index
    %8 = vector.load %arg3[%c0_7, %c0_8] : memref<32x128xf32, #tpu.memory_space<vmem>>, vector<32x128xf32>
    %cst_9 = arith.constant dense<0.000000e+00> : vector<8x128xf32>
    %9 = tpu.matmul %5, %8, %cst_9 {dimension_numbers = #tpu.dot_dimension_numbers<[1], [0], [0], [1], [0, 0, 1, 1], [], []>} : vector<8x32xf32>, vector<32x128xf32>, vector<8x128xf32> -> vector<8x128xf32>
    %10 = arith.addf %7, %9 : vector<8x128xf32>
    %c0_10 = arith.constant 0 : index
    %c0_11 = arith.constant 0 : index
    %11 = vector.load %arg4[%c0_10, %c0_11] : memref<1x128xf32, #tpu.memory_space<vmem>>, vector<1x128xf32>
    %12 = vector.broadcast %11 : vector<1x128xf32> to vector<8x128xf32>
    %13 = arith.addf %10, %12 : vector<8x128xf32>
    %14 = vector.extract_strided_slice %13 {offsets = [0, 0], sizes = [8, 32], strides = [1, 1]} : vector<8x128xf32> to vector<8x32xf32>
    %cst_12 = arith.constant 0.000000e+00 : f32
    %15 = vector.broadcast %cst_12 : f32 to vector<8x32xf32>
    %16 = arith.subf %15, %14 : vector<8x32xf32>
    %17 = math.exp %16 : vector<8x32xf32>
    %cst_13 = arith.constant 1.000000e+00 : f32
    %18 = vector.broadcast %cst_13 : f32 to vector<8x32xf32>
    %19 = arith.addf %18, %17 : vector<8x32xf32>
    %cst_14 = arith.constant 1.000000e+00 : f32
    %20 = vector.broadcast %cst_14 : f32 to vector<8x32xf32>
    %21 = arith.divf %20, %19 : vector<8x32xf32>
    %22 = vector.extract_strided_slice %13 {offsets = [0, 32], sizes = [8, 32], strides = [1, 1]} : vector<8x128xf32> to vector<8x32xf32>
    %cst_15 = arith.constant 0.000000e+00 : f32
    %23 = vector.broadcast %cst_15 : f32 to vector<8x32xf32>
    %24 = arith.subf %23, %22 : vector<8x32xf32>
    %25 = math.exp %24 : vector<8x32xf32>
    %cst_16 = arith.constant 1.000000e+00 : f32
    %26 = vector.broadcast %cst_16 : f32 to vector<8x32xf32>
    %27 = arith.addf %26, %25 : vector<8x32xf32>
    %cst_17 = arith.constant 1.000000e+00 : f32
    %28 = vector.broadcast %cst_17 : f32 to vector<8x32xf32>
    %29 = arith.divf %28, %27 : vector<8x32xf32>
    %30 = vector.extract_strided_slice %13 {offsets = [0, 64], sizes = [8, 32], strides = [1, 1]} : vector<8x128xf32> to vector<8x32xf32>
    %31 = math.tanh %30 : vector<8x32xf32>
    %32 = vector.extract_strided_slice %13 {offsets = [0, 96], sizes = [8, 32], strides = [1, 1]} : vector<8x128xf32> to vector<8x32xf32>
    %cst_18 = arith.constant 0.000000e+00 : f32
    %33 = vector.broadcast %cst_18 : f32 to vector<8x32xf32>
    %34 = arith.subf %33, %32 : vector<8x32xf32>
    %35 = math.exp %34 : vector<8x32xf32>
    %cst_19 = arith.constant 1.000000e+00 : f32
    %36 = vector.broadcast %cst_19 : f32 to vector<8x32xf32>
    %37 = arith.addf %36, %35 : vector<8x32xf32>
    %cst_20 = arith.constant 1.000000e+00 : f32
    %38 = vector.broadcast %cst_20 : f32 to vector<8x32xf32>
    %39 = arith.divf %38, %37 : vector<8x32xf32>
    %c0_21 = arith.constant 0 : index
    %c0_22 = arith.constant 0 : index
    %40 = vector.load %arg7[%c0_21, %c0_22] : memref<8x32xf32, #tpu.memory_space<vmem>>, vector<8x32xf32>
    %41 = arith.mulf %29, %40 : vector<8x32xf32>
    %42 = arith.mulf %21, %31 : vector<8x32xf32>
    %43 = arith.addf %41, %42 : vector<8x32xf32>
    %44 = math.tanh %43 : vector<8x32xf32>
    %45 = arith.mulf %39, %44 : vector<8x32xf32>
    %c0_23 = arith.constant 0 : index
    %c0_24 = arith.constant 0 : index
    %46 = vector.load %arg7[%c0_23, %c0_24] : memref<8x32xf32, #tpu.memory_space<vmem>>, vector<8x32xf32>
    tpu.vector_store %arg7[%c0_23, %c0_24], %43 {strides = array<i32>} : memref<8x32xf32, #tpu.memory_space<vmem>>, vector<8x32xf32>,
    %c0_25 = arith.constant 0 : index
    %c0_26 = arith.constant 0 : index
    %47 = vector.load %arg6[%c0_25, %c0_26] : memref<8x32xf32, #tpu.memory_space<vmem>>, vector<8x32xf32>
    tpu.vector_store %arg6[%c0_25, %c0_26], %45 {strides = array<i32>} : memref<8x32xf32, #tpu.memory_space<vmem>>, vector<8x32xf32>,
    %c0_27 = arith.constant 0 : index
    %c0_28 = arith.constant 0 : index
    %c0_29 = arith.constant 0 : index
    %48 = vector.load %arg5[%c0_27, %c0_28, %c0_29] : memref<1x8x32xf32, #tpu.memory_space<vmem>>, vector<1x8x32xf32>
    %49 = vector.shape_cast %48 : vector<1x8x32xf32> to vector<8x32xf32>
    %50 = vector.shape_cast %45 : vector<8x32xf32> to vector<1x8x32xf32>
    tpu.vector_store %arg5[%c0_27, %c0_28, %c0_29], %50 {strides = array<i32>} : memref<1x8x32xf32, #tpu.memory_space<vmem>>, vector<1x8x32xf32>,
    return
  }
  func.func @transform_0(%arg0: i32) -> (i32, i32, i32) {
    %c0_i32 = arith.constant 0 : i32
    %c0_i32_0 = arith.constant 0 : i32
    %c0_i32_1 = arith.constant 0 : i32
    return %arg0, %c0_i32, %c0_i32_0 : i32, i32, i32
  }
  func.func @transform_1(%arg0: i32) -> (i32, i32) {
    %c0_i32 = arith.constant 0 : i32
    %c0_i32_0 = arith.constant 0 : i32
    %c0_i32_1 = arith.constant 0 : i32
    return %c0_i32, %c0_i32_0 : i32, i32
  }
  func.func @transform_2(%arg0: i32) -> (i32, i32) {
    %c0_i32 = arith.constant 0 : i32
    %c0_i32_0 = arith.constant 0 : i32
    %c0_i32_1 = arith.constant 0 : i32
    return %c0_i32, %c0_i32_0 : i32, i32
  }
  func.func @transform_3(%arg0: i32) -> (i32, i32) {
    %c0_i32 = arith.constant 0 : i32
    %c0_i32_0 = arith.constant 0 : i32
    %c0_i32_1 = arith.constant 0 : i32
    return %c0_i32, %c0_i32_0 : i32, i32
  }
  func.func @transform_4(%arg0: i32) -> (i32, i32, i32) {
    %c0_i32 = arith.constant 0 : i32
    %c0_i32_0 = arith.constant 0 : i32
    %c0_i32_1 = arith.constant 0 : i32
    return %arg0, %c0_i32, %c0_i32_0 : i32, i32, i32
  }
}

module attributes {stable_mosaic.version = 11 : i64} {
  func.func @pair_loss_kernel(%arg0: i32, %arg1: memref<8x8x32xf32, #tpu.memory_space<vmem>>, %arg2: memref<8x8x32xf32, #tpu.memory_space<vmem>>, %arg3: memref<8x1xi32, #tpu.memory_space<vmem>>, %arg4: memref<1x1x32xf32, #tpu.memory_space<vmem>>, %arg5: memref<1x1x32xf32, #tpu.memory_space<vmem>>, %arg6: memref<1x1xf32, #tpu.memory_space<vmem>>, %arg7: memref<1x1xf32, #tpu.memory_space<vmem>>, %arg8: memref<1x1xf32, #tpu.memory_space<vmem>>) attributes {dimension_semantics = [#tpu.dimension_semantics<arbitrary>], iteration_bounds = array<i64: 1>, scalar_prefetch = 0 : i64, scratch_operands = 0 : i64, tpu.core_type = #tpu.core_type<tc>, window_params = [{transform_indices = @transform_0, window_bounds = array<i64: 8, 8, 32>}, {transform_indices = @transform_1, window_bounds = array<i64: 8, 8, 32>}, {transform_indices = @transform_2, window_bounds = array<i64: 8, 1>}, {pipeline_mode = #tpu.pipeline_mode<synchronous>, transform_indices = @transform_3, window_bounds = array<i64: 1, 1, 32>}, {pipeline_mode = #tpu.pipeline_mode<synchronous>, transform_indices = @transform_4, window_bounds = array<i64: 1, 1, 32>}, {pipeline_mode = #tpu.pipeline_mode<synchronous>, transform_indices = @transform_5, window_bounds = array<i64: 1, 1>}, {pipeline_mode = #tpu.pipeline_mode<synchronous>, transform_indices = @transform_6, window_bounds = array<i64: 1, 1>}, {pipeline_mode = #tpu.pipeline_mode<synchronous>, transform_indices = @transform_7, window_bounds = array<i64: 1, 1>}]} {
    %c0_i32 = arith.constant 0 : i32
    %0 = arith.cmpi eq, %arg0, %c0_i32 : i32
    %1 = arith.extui %0 : i1 to i32
    %c0_i32_0 = arith.constant 0 : i32
    %2 = arith.cmpi ne, %1, %c0_i32_0 : i32
    scf.if %2 {
      %cst_36 = arith.constant 0.000000e+00 : f32
      %77 = vector.broadcast %cst_36 : f32 to vector<1x1xf32>
      %c0_37 = arith.constant 0 : index
      %c0_38 = arith.constant 0 : index
      %78 = vector.load %arg7[%c0_37, %c0_38] : memref<1x1xf32, #tpu.memory_space<vmem>>, vector<1x1xf32>
      tpu.vector_store %arg7[%c0_37, %c0_38], %77 {strides = array<i32>} : memref<1x1xf32, #tpu.memory_space<vmem>>, vector<1x1xf32>,
      %cst_39 = arith.constant 0.000000e+00 : f32
      %79 = vector.broadcast %cst_39 : f32 to vector<1x1xf32>
      %c0_40 = arith.constant 0 : index
      %c0_41 = arith.constant 0 : index
      %80 = vector.load %arg8[%c0_40, %c0_41] : memref<1x1xf32, #tpu.memory_space<vmem>>, vector<1x1xf32>
      tpu.vector_store %arg8[%c0_40, %c0_41], %79 {strides = array<i32>} : memref<1x1xf32, #tpu.memory_space<vmem>>, vector<1x1xf32>,
    } else {
    }
    %c0 = arith.constant 0 : index
    %c0_1 = arith.constant 0 : index
    %c0_2 = arith.constant 0 : index
    %3 = vector.load %arg1[%c0, %c0_1, %c0_2] : memref<8x8x32xf32, #tpu.memory_space<vmem>>, vector<8x8x32xf32>
    %c0_3 = arith.constant 0 : index
    %c0_4 = arith.constant 0 : index
    %c0_5 = arith.constant 0 : index
    %4 = vector.load %arg2[%c0_3, %c0_4, %c0_5] : memref<8x8x32xf32, #tpu.memory_space<vmem>>, vector<8x8x32xf32>
    %c0_6 = arith.constant 0 : index
    %c0_7 = arith.constant 0 : index
    %5 = vector.load %arg3[%c0_6, %c0_7] : memref<8x1xi32, #tpu.memory_space<vmem>>, vector<8x1xi32>
    %c0_8 = arith.constant 0 : index
    %c0_9 = arith.constant 0 : index
    %c0_10 = arith.constant 0 : index
    %6 = vector.load %arg4[%c0_8, %c0_9, %c0_10] : memref<1x1x32xf32, #tpu.memory_space<vmem>>, vector<1x1x32xf32>
    %7 = vector.broadcast %6 : vector<1x1x32xf32> to vector<8x8x32xf32>
    %8 = arith.mulf %3, %7 : vector<8x8x32xf32>
    %cst = arith.constant dense<0.000000e+00> : vector<8x8xf32>
    %9 = vector.multi_reduction <add>, %8, %cst [2] : vector<8x8x32xf32> to vector<8x8xf32>
    %c0_11 = arith.constant 0 : index
    %c0_12 = arith.constant 0 : index
    %c0_13 = arith.constant 0 : index
    %10 = vector.load %arg5[%c0_11, %c0_12, %c0_13] : memref<1x1x32xf32, #tpu.memory_space<vmem>>, vector<1x1x32xf32>
    %11 = vector.broadcast %10 : vector<1x1x32xf32> to vector<8x8x32xf32>
    %12 = arith.mulf %4, %11 : vector<8x8x32xf32>
    %cst_14 = arith.constant dense<0.000000e+00> : vector<8x8xf32>
    %13 = vector.multi_reduction <add>, %12, %cst_14 [2] : vector<8x8x32xf32> to vector<8x8xf32>
    %14 = vector.shape_cast %9 : vector<8x8xf32> to vector<8x8x1xf32>
    %15 = vector.shape_cast %13 : vector<8x8xf32> to vector<8x1x8xf32>
    %16 = vector.broadcast %14 : vector<8x8x1xf32> to vector<8x8x8xf32>
    %17 = vector.broadcast %15 : vector<8x1x8xf32> to vector<8x8x8xf32>
    %18 = arith.addf %16, %17 : vector<8x8x8xf32>
    %c0_15 = arith.constant 0 : index
    %c0_16 = arith.constant 0 : index
    %19 = vector.load %arg6[%c0_15, %c0_16] : memref<1x1xf32, #tpu.memory_space<vmem>>, vector<1x1xf32>
    %20 = vector.shape_cast %19 : vector<1x1xf32> to vector<1x1x1xf32>
    %21 = vector.broadcast %20 : vector<1x1x1xf32> to vector<8x8x8xf32>
    %22 = arith.addf %18, %21 : vector<8x8x8xf32>
    %23 = tpu.iota {dimensions = array<i32: 1>} : vector<8x8x8xi32>
    %24 = tpu.iota {dimensions = array<i32: 2>} : vector<8x8x8xi32>
    %25 = vector.shape_cast %5 : vector<8x1xi32> to vector<8x1x1xi32>
    %26 = arith.cmpi sgt, %24, %23 : vector<8x8x8xi32>
    %27 = vector.broadcast %25 : vector<8x1x1xi32> to vector<8x8x8xi32>
    %28 = arith.cmpi slt, %24, %27 : vector<8x8x8xi32>
    %29 = arith.andi %26, %28 : vector<8x8x8xi1>
    %30 = tpu.iota {dimensions = array<i32: 1>} : vector<8x8xi32>
    %c1_i32 = arith.constant 1 : i32
    %31 = vector.broadcast %c1_i32 : i32 to vector<8x1xi32>
    %32 = arith.subi %5, %31 : vector<8x1xi32>
    %33 = vector.broadcast %32 : vector<8x1xi32> to vector<8x8xi32>
    %34 = arith.cmpi slt, %30, %33 : vector<8x8xi32>
    %cst_17 = arith.constant -1.000000e+30 : f32
    %35 = vector.broadcast %cst_17 : f32 to vector<8x8x8xf32>
    %36 = arith.select %29, %22, %35 : vector<8x8x8xi1>, vector<8x8x8xf32>
    %cst_18 = arith.constant dense<0xFF800000> : vector<8x8xf32>
    %37 = vector.multi_reduction <maximumf>, %36, %cst_18 [2] : vector<8x8x8xf32> to vector<8x8xf32>
    %cst_19 = arith.constant 0.000000e+00 : f32
    %38 = vector.broadcast %cst_19 : f32 to vector<8x8xf32>
    %39 = arith.select %34, %37, %38 : vector<8x8xi1>, vector<8x8xf32>
    %40 = vector.shape_cast %39 : vector<8x8xf32> to vector<8x8x1xf32>
    %41 = vector.broadcast %40 : vector<8x8x1xf32> to vector<8x8x8xf32>
    %42 = arith.subf %36, %41 : vector<8x8x8xf32>
    %43 = math.exp %42 : vector<8x8x8xf32>
    %cst_20 = arith.constant dense<0.000000e+00> : vector<8x8xf32>
    %44 = vector.multi_reduction <add>, %43, %cst_20 [2] : vector<8x8x8xf32> to vector<8x8xf32>
    %cst_21 = arith.constant 1.000000e-30 : f32
    %45 = vector.broadcast %cst_21 : f32 to vector<8x8xf32>
    %46 = arith.maximumf %44, %45 : vector<8x8xf32>
    %47 = math.log %46 : vector<8x8xf32>
    %48 = arith.addf %39, %47 : vector<8x8xf32>
    %c1_i32_22 = arith.constant 1 : i32
    %49 = vector.broadcast %c1_i32_22 : i32 to vector<8x8x8xi32>
    %50 = arith.addi %23, %49 : vector<8x8x8xi32>
    %51 = arith.cmpi eq, %24, %50 : vector<8x8x8xi32>
    %52 = arith.andi %51, %29 : vector<8x8x8xi1>
    %cst_23 = arith.constant 0.000000e+00 : f32
    %53 = vector.broadcast %cst_23 : f32 to vector<8x8x8xf32>
    %54 = arith.select %52, %22, %53 : vector<8x8x8xi1>, vector<8x8x8xf32>
    %cst_24 = arith.constant dense<0.000000e+00> : vector<8x8xf32>
    %55 = vector.multi_reduction <add>, %54, %cst_24 [2] : vector<8x8x8xf32> to vector<8x8xf32>
    %56 = arith.subf %48, %55 : vector<8x8xf32>
    %cst_25 = arith.constant 0.000000e+00 : f32
    %57 = vector.broadcast %cst_25 : f32 to vector<8x8xf32>
    %58 = arith.select %34, %56, %57 : vector<8x8xi1>, vector<8x8xf32>
    %c0_26 = arith.constant 0 : index
    %c0_27 = arith.constant 0 : index
    %59 = vector.load %arg7[%c0_26, %c0_27] : memref<1x1xf32, #tpu.memory_space<vmem>>, vector<1x1xf32>
    %60 = vector.shape_cast %58 : vector<8x8xf32> to vector<1x8x8xf32>
    %cst_28 = arith.constant dense<0.000000e+00> : vector<1xf32>
    %61 = vector.multi_reduction <add>, %60, %cst_28 [1, 2] : vector<1x8x8xf32> to vector<1xf32>
    %62 = vector.shape_cast %61 : vector<1xf32> to vector<1x1x1xf32>
    %63 = vector.extract %62[0, 0, 0] : f32 from vector<1x1x1xf32>
    %64 = vector.broadcast %63 : f32 to vector<1x1xf32>
    %65 = arith.addf %59, %64 : vector<1x1xf32>
    %c0_29 = arith.constant 0 : index
    %c0_30 = arith.constant 0 : index
    %66 = vector.load %arg7[%c0_29, %c0_30] : memref<1x1xf32, #tpu.memory_space<vmem>>, vector<1x1xf32>
    tpu.vector_store %arg7[%c0_29, %c0_30], %65 {strides = array<i32>} : memref<1x1xf32, #tpu.memory_space<vmem>>, vector<1x1xf32>,
    %c0_31 = arith.constant 0 : index
    %c0_32 = arith.constant 0 : index
    %67 = vector.load %arg8[%c0_31, %c0_32] : memref<1x1xf32, #tpu.memory_space<vmem>>, vector<1x1xf32>
    %68 = arith.extui %34 : vector<8x8xi1> to vector<8x8xi32>
    %69 = arith.sitofp %68 : vector<8x8xi32> to vector<8x8xf32>
    %70 = vector.shape_cast %69 : vector<8x8xf32> to vector<1x8x8xf32>
    %cst_33 = arith.constant dense<0.000000e+00> : vector<1xf32>
    %71 = vector.multi_reduction <add>, %70, %cst_33 [1, 2] : vector<1x8x8xf32> to vector<1xf32>
    %72 = vector.shape_cast %71 : vector<1xf32> to vector<1x1x1xf32>
    %73 = vector.extract %72[0, 0, 0] : f32 from vector<1x1x1xf32>
    %74 = vector.broadcast %73 : f32 to vector<1x1xf32>
    %75 = arith.addf %67, %74 : vector<1x1xf32>
    %c0_34 = arith.constant 0 : index
    %c0_35 = arith.constant 0 : index
    %76 = vector.load %arg8[%c0_34, %c0_35] : memref<1x1xf32, #tpu.memory_space<vmem>>, vector<1x1xf32>
    tpu.vector_store %arg8[%c0_34, %c0_35], %75 {strides = array<i32>} : memref<1x1xf32, #tpu.memory_space<vmem>>, vector<1x1xf32>,
    return
  }
  func.func @transform_0(%arg0: i32) -> (i32, i32, i32) {
    %c0_i32 = arith.constant 0 : i32
    %c0_i32_0 = arith.constant 0 : i32
    %c0_i32_1 = arith.constant 0 : i32
    return %arg0, %c0_i32, %c0_i32_0 : i32, i32, i32
  }
  func.func @transform_1(%arg0: i32) -> (i32, i32, i32) {
    %c0_i32 = arith.constant 0 : i32
    %c0_i32_0 = arith.constant 0 : i32
    %c0_i32_1 = arith.constant 0 : i32
    return %arg0, %c0_i32, %c0_i32_0 : i32, i32, i32
  }
  func.func @transform_2(%arg0: i32) -> (i32, i32) {
    %c0_i32 = arith.constant 0 : i32
    %c0_i32_0 = arith.constant 0 : i32
    return %arg0, %c0_i32 : i32, i32
  }
  func.func @transform_3(%arg0: i32) -> (i32, i32, i32) {
    %c0_i32 = arith.constant 0 : i32
    %c0_i32_0 = arith.constant 0 : i32
    %c0_i32_1 = arith.constant 0 : i32
    %c0_i32_2 = arith.constant 0 : i32
    return %c0_i32, %c0_i32_0, %c0_i32_1 : i32, i32, i32
  }
  func.func @transform_4(%arg0: i32) -> (i32, i32, i32) {
    %c0_i32 = arith.constant 0 : i32
    %c0_i32_0 = arith.constant 0 : i32
    %c0_i32_1 = arith.constant 0 : i32
    %c0_i32_2 = arith.constant 0 : i32
    return %c0_i32, %c0_i32_0, %c0_i32_1 : i32, i32, i32
  }
  func.func @transform_5(%arg0: i32) -> (i32, i32) {
    %c0_i32 = arith.constant 0 : i32
    %c0_i32_0 = arith.constant 0 : i32
    %c0_i32_1 = arith.constant 0 : i32
    return %c0_i32, %c0_i32_0 : i32, i32
  }
  func.func @transform_6(%arg0: i32) -> (i32, i32) {
    %c0_i32 = arith.constant 0 : i32
    %c0_i32_0 = arith.constant 0 : i32
    %c0_i32_1 = arith.constant 0 : i32
    return %c0_i32, %c0_i32_0 : i32, i32
  }
  func.func @transform_7(%arg0: i32) -> (i32, i32) {
    %c0_i32 = arith.constant 0 : i32
    %c0_i32_0 = arith.constant 0 : i32
    %c0_i32_1 = arith.constant 0 : i32
    return %c0_i32, %c0_i32_0 : i32, i32
  }
}

</mosaic_0001>

<bundles_post_ra>
// kernel: dli_loss_full.2
= control target key start
LH: loop header
LB: loop body
LE: loop exit
PB: predicated region body
PF: predicated region fallthrough
CT: control target
= control target key end

     0   :  { %s578_s15 = smov 0   ;;  %s633_s0 = inlined_call_operand.vmem [shape: f32[8,8,32], index: 0, kind: input, shape index: {}]   ;;  %s634_s1 = inlined_call_operand.vmem [shape: f32[32,128], index: 1, kind: input, shape index: {}]   ;;  %s635_s2 = inlined_call_operand.vmem [shape: f32[32,128], index: 2, kind: input, shape index: {}]   ;;  %s636_s3 = inlined_call_operand.vmem [shape: f32[1,128], index: 3, kind: input, shape index: {}]   ;;  %s637_s4 = inlined_call_operand.vmem [shape: f32[8,8,32], index: 4, kind: output, shape index: {}]  }
   0x1 LB: > { %s458_s16 = sadd.s32 4294967295, %s544_s15   ;;  %p462_p0 = scmp.ge.s32.totalorder %s544_s15, 1  ;;  %s544_s15 = sphi %s578_s15, %s14_s15  }
   0x2   : > { %p161_p1 = scmp.lt.s32.totalorder %s544_s15, 9 }
   0x4   : > { %p162_p2 = pnand %p462_p0, %p161_p1 }
   0x5   : > { %p185_p3 = scmp.lt.s32.totalorder (!%p162_p2), %s458_s16, 7  ;;  %p465_p4 = scmp.ne.s32.totalorder (!%p162_p2), %s458_s16, 0 }
   0x6   : > { %165 = sbr.rel (%p162_p2) target bundleno = 737 (0x2e1), region = 36 }
   0xd   : > { %s186_s17 = scalar_select %p185_p3, %s458_s16, 7 }
   0xe   : > { %196 = sbr.rel (%p465_p4) target bundleno = 21 (0x15), region = 40  ;;  %vm197_vm0 = vcmask (!%p465_p4), 261120   ;;  %v546_v0 = vmov (!%p465_p4), 0.0  }
   0xf   : > { %s463_s18 = sshll.u32 %s186_s17, 3  ;;  %198 = vst.msk [vmem:[#allocation2] sm:$0xff] (!%p465_p4), %vm197_vm0, %v546_v0  ;;  %199 = vst.msk [vmem:[#allocation3] sm:$0xff] (!%p465_p4), %vm197_vm0, %v546_v0 }
  0x10   : > { %s589_s21 = scalar_lea.vmem %s633_s0, %s463_s18  ;;  %s594_s24 = scalar_lea.vmem %s637_s4, %s463_s18 }
  0x15 PF: > { %v206_v1 = vld [vmem:[%s635_s2] sm:$0xff]  ;;  %v207_v2 = vld [vmem:[%s635_s2 + $0x8] sm:$0xff]  ;;  %v547_v4 = vmov 0.0|0.0   ;;  %v208_v7 = vld [vmem:[%s635_s2 + $0x10] sm:$0xff]  ;;  %vm548_vm1 = vmmov 0   ;;  %v549_v12 = vmov 0.0  }
  0x16   : > { %v202_v3 = vld [vmem:[%s634_s1] sm:$0xff]  ;;  %503 = vmatprep.subr.bf16.mxu0 %v547_v4  ;;  %509 = vmatprep.subr.bf16.mxu1 %v547_v4  ;;  %v504_v5 = vpack.c.bf16 %v207_v2, %v206_v1  ;;  %v203_v6 = vld [vmem:[%s634_s1 + $0x8] sm:$0xff]  ;;  %v209_v8 = vld [vmem:[%s635_s2 + $0x18] sm:$0xff]  ;;  %vm210_vm2 = vcmask 261120   ;;  %s550_s18 = smov 64   ;;  %s551_s19 = smov 32  }
  0x17   : > { %v510_v9 = vpack.c.bf16 %v203_v6, %v202_v3  ;;  %v204_v10 = vld [vmem:[%s634_s1 + $0x10] sm:$0xff]  ;;  %v205_v11 = vld [vmem:[%s634_s1 + $0x18] sm:$0xff]  ;;  %489 = vmatprep.mubr.msk.f32.mxu0 %vm548_vm1, %v549_v12  ;;  %500 = vmatprep.mubr.msk.f32.mxu1 %vm548_vm1, %v549_v12  ;;  %v507_v13 = vpack.c.bf16 %v209_v8, %v208_v7  ;;  %v201_v15 = vld [vmem:[#allocation2] sm:$0xff]  ;;  %s552_s20 = smov 96  }
  0x18   : > { %505 = vmatpush3.bf16.msra.mxu0 %v504_v5  ;;  %v513_v14 = vpack.c.bf16 %v205_v11, %v204_v10  ;;  %v200_v16 = vld [vmem:[%s589_s21] sm:$0xff]  ;;  %v372_v25 = vld [vmem:[#allocation3] sm:$0xff] }
  0x19   : > { %511 = vmatpush3.bf16.msra.mxu1 %v510_v9  ;;  %506 = vmatprep.subr.bf16.mxu0 %v547_v4  ;;  %v468_v19 = vld [vmem:[%s636_s3] ss:$0 sm:$0xff] }
  0x1a   : > { %512 = vmatprep.subr.bf16.mxu1 %v547_v4 }
  0x1c   : > { %508 = vmatpush3.bf16.msra.mxu0 %v507_v13 }
  0x1d   : > { %514 = vmatpush3.bf16.msra.mxu1 %v513_v14 }
  0x1f   : > { %490 = vmatmul.mubr.msk.f32.vlgmr.msra.gmra.mrb[0].mxu0 %vm210_vm2, %v201_v15 }
  0x20   : > { %501 = vmatmul.mubr.msk.f32.vlgmr.msra.gmra.mrb[0].mxu1 %vm210_vm2, %v200_v16 }
  0xf2   : > { %v280_v17 = vpop.f32.mrb[0].mxu0 }
  0xf3   : > { %v353_v18 = vpop.f32.mrb[0].mxu1  ;;  %v491_v20 = vpop.f32.mrb[1].mxu0 }
  0xf4   : > { %v354_v21 = vadd.f32 %v353_v18, %v280_v17  ;;  %v502_v22 = vpop.f32.mrb[1].mxu1 }
  0xf6   : > { %v364_v23 = vadd.f32 %v468_v19, %v354_v21 }
  0xf8   : > { %530 = vtanh.f32 %v364_v23  ;;  %v365_v26 = vsub.f32 0.0, %v364_v23 }
  0xfa   : > { %v366_v27 = vmul.f32 1.442695, %v365_v26 }
  0xfc   : > { %532 = vpow2.f32 %v366_v27 }
 0x102   : > { %v531_v24 = vpop.eup %530 }
 0x103   : > { %379 = vrot.lane.b32.xlu0 %v531_v24, %s550_s18 }
 0x106   : > { %v533_v28 = vpop.eup %532 }
 0x107   : > { %374 = vrot.lane.b32.xlu0 %v372_v25, %s551_s19  ;;  %v368_v29 = vadd.f32 1.0, %v533_v28 }
 0x109   : > { %534 = vrcp.f32 %v368_v29 }
 0x113   : > { %v535_v30 = vpop.eup %534 }
 0x175   : > { %v380_v31 = vpop.permute.xlu0 %379 }
 0x176   : > { %v382_v32 = vmul.f32 %v535_v30, %v380_v31 }
 0x178   : > { %384 = vrot.lane.b32.xlu1 %v382_v32, %s551_s19 }
 0x179   : > { %v375_v33 = vpop.permute.xlu0 %374 }
 0x17a   : > { %v377_v34 = vmul.f32 %v535_v30, %v375_v33 }
 0x1ea   : > { %v385_v35 = vpop.permute.xlu1 %384 }
 0x1eb   : > { %v387_v36 = vadd.f32 %v385_v35, %v377_v34 }
 0x1ed   : > { %536 = vtanh.f32 %v387_v36  ;;  %395 = vrot.lane.b32.xlu0 %v387_v36, %s552_s20 }
 0x1f7   : > { %v537_v37 = vpop.eup %536 }
 0x1f8   : > { %390 = vrot.lane.b32.xlu1 %v537_v37, %s550_s18 }
 0x25f   : > { %v396_v38 = vpop.permute.xlu0 %395 }
 0x260   : > { %398 = vst.msk [vmem:[#allocation3] sm:$0xff] %vm210_vm2, %v396_v38 }
 0x26a   : > { %v391_v39 = vpop.permute.xlu1 %390 }
 0x26b   : > { %v393_v40 = vmul.f32 %v535_v30, %v391_v39 }
 0x26d   : > { %400 = vrot.lane.b32.xlu1 %v393_v40, %s551_s19 }
 0x2df   : > { %v401_v41 = vpop.permute.xlu1 %400 }
 0x2e0   : > { %403 = vst.msk [vmem:[#allocation2] sm:$0xff] %vm210_vm2, %v401_v41  ;;  %404 = vst.msk [vmem:[%s594_s24] sm:$0xff] %vm210_vm2, %v401_v41 }
 0x2e1 PF: > { %s14_s15 = sadd.s32 1, %s544_s15  }
 0x2e2   : > { %p11_p5 = scmp.ge.s32.totalorder %s14_s15, 10  }
 0x2e4   :  { %13 = sbr.rel (!%p11_p5) target bundleno = 1 (0x1), region = 70 }

// kernel: dli_loss_full.3
= control target key start
LH: loop header
LB: loop body
LE: loop exit
PB: predicated region body
PF: predicated region fallthrough
CT: control target
= control target key end

     0   :  { %s1337_s0 = inlined_call_operand.vmem [shape: f32[8,8,32], index: 0, kind: input, shape index: {}]   ;;  %s1338_s1 = inlined_call_operand.vmem [shape: f32[8,8,32], index: 1, kind: input, shape index: {}]   ;;  %s1339_s2 = inlined_call_operand.vmem [shape: s32[8,1], index: 2, kind: input, shape index: {}]   ;;  %s1340_s3 = inlined_call_operand.vmem [shape: f32[1,1,32], index: 3, kind: input, shape index: {}]   ;;  %s1341_s4 = inlined_call_operand.vmem [shape: f32[1,1,32], index: 4, kind: input, shape index: {}]   ;;  %s1342_s5 = inlined_call_operand.<no memory space> [shape: f32[1,1], index: 5, kind: input, shape index: {}]   ;;  %s1343_s6 = inlined_call_operand.hbm [shape: f32[1,1], index: 6, kind: output, shape index: {0}]   ;;  %s1344_s7 = inlined_call_operand.hbm [shape: f32[1,1], index: 7, kind: output, shape index: {1}]  }
   0x1   :  { %v13_v0 = vstv %s1342_s5 }
   0x2   :  { %14 = vst [vmem:[#allocation2] sm:$0x1] %v13_v0 }
   0x3   :  { %15 = vsyncpa [#allocation4], 0  ;;  %v46_v1 = vld [vmem:[%s1338_s1 + $0x10] sm:$0xff]  ;;  %vm68_vm0 = vcmask 261120   ;;  %v803_v2 = vld [vmem:[%s1341_s4] ss:$0 sm:$0xff] }
   0x4   :  { %v44_v3 = vld [vmem:[%s1338_s1] sm:$0xff]  ;;  %v102_v4 = vmul.f32 %v803_v2, %v46_v1  ;;  %v45_v6 = vld [vmem:[%s1338_s1 + $0x8] sm:$0xff]  ;;  %v899_v9 = vmov 0   ;;  %v47_v13 = vld [vmem:[%s1338_s1 + $0x18] sm:$0xff] }
   0x5   :  { %v100_v5 = vmul.f32 %v803_v2, %v44_v3  ;;  %v36_v7 = vld [vmem:[%s1337_s0] sm:$0xff]  ;;  %817 = vset.pattern.permute.xlu1 %v899_v9  ;;  %816 = vset.pattern.permute.xlu0 %v899_v9  ;;  %v101_v10 = vmul.f32 %v803_v2, %v45_v6  ;;  %v37_v12 = vld [vmem:[%s1337_s0 + $0x8] sm:$0xff]  ;;  %v103_v19 = vmul.f32 %v803_v2, %v47_v13  ;;  %v38_v20 = vld [vmem:[%s1337_s0 + $0x10] sm:$0xff] }
   0x6   :  { %v802_v8 = vld [vmem:[%s1340_s3] ss:$0 sm:$0xff]  ;;  %v114_v14 = vsel %vm68_vm0, %v102_v4, 0.0 }
   0x7   :  { %v60_v11 = vmul.f32 %v802_v8, %v36_v7  ;;  %v108_v15 = vsel %vm68_vm0, %v100_v5, 0.0  ;;  %115 = vadd.xlane.f32.xlu1 %v114_v14  ;;  %v111_v16 = vsel %vm68_vm0, %v101_v10, 0.0  ;;  %v61_v18 = vmul.f32 %v802_v8, %v37_v12  ;;  %v48_v21 = vld [vmem:[%s1338_s1 + $0x20] sm:$0xff] }
   0x8   :  { %109 = vadd.xlane.f32.xlu0 %v108_v15 }
   0x9   :  { %v69_v17 = vsel %vm68_vm0, %v60_v11, 0.0 }
   0xa   :  { %16 = vsyncpa [#allocation6], 0  ;;  %v72_v22 = vsel %vm68_vm0, %v61_v18, 0.0  ;;  %v117_v23 = vsel %vm68_vm0, %v103_v19, 0.0  ;;  %v62_v24 = vmul.f32 %v802_v8, %v38_v20  ;;  %v104_v25 = vmul.f32 %v803_v2, %v48_v21  ;;  %v39_v26 = vld [vmem:[%s1337_s0 + $0x18] sm:$0xff]  ;;  %v49_v27 = vld [vmem:[%s1338_s1 + $0x28] sm:$0xff] }
   0xb   :  { %70 = vadd.xlane.f32.xlu1 %v69_v17  ;;  %v63_v30 = vmul.f32 %v802_v8, %v39_v26  ;;  %v105_v31 = vmul.f32 %v803_v2, %v49_v27  ;;  %v40_v32 = vld [vmem:[%s1337_s0 + $0x20] sm:$0xff]  ;;  %v50_v33 = vld [vmem:[%s1338_s1 + $0x30] sm:$0xff]  ;;  %v41_v38 = vld [vmem:[%s1337_s0 + $0x28] sm:$0xff]  ;;  %v140_v46 = vlaneseq  ;;  %v900_v47 = vmov 1966171168   ;;  %s903_s4 = smov [#allocation5]  }
   0xc   :  { %112 = vadd.xlane.f32.xlu0 %v111_v16  ;;  %v75_v28 = vsel %vm68_vm0, %v62_v24, 0.0  ;;  %v120_v29 = vsel %vm68_vm0, %v104_v25, 0.0  ;;  %v64_v36 = vmul.f32 %v802_v8, %v40_v32  ;;  %v106_v37 = vmul.f32 %v803_v2, %v50_v33  ;;  %v51_v39 = vld [vmem:[%s1338_s1 + $0x38] sm:$0xff]  ;;  %v42_v44 = vld [vmem:[%s1337_s0 + $0x30] sm:$0xff]  ;;  %v1023_v58 = vld [vmem:[%s1339_s2] sm:$0xff]  ;;  %s902_s2 = smov [#allocation3]  }
   0xd   :  { %v78_v34 = vsel %vm68_vm0, %v63_v30, 0.0  ;;  %v123_v35 = vsel %vm68_vm0, %v105_v31, 0.0  ;;  %v65_v42 = vmul.f32 %v802_v8, %v41_v38  ;;  %v107_v43 = vmul.f32 %v803_v2, %v51_v39  ;;  %v43_v45 = vld [vmem:[%s1337_s0 + $0x38] sm:$0xff]  ;;  %v804_v4 = vld [vmem:[#allocation2] ss:$0 sm:$0xff]  ;;  %s780_s12 = sshll.u32 %s902_s2, 4  ;;  %s781_s12 = int_to_ptr.vmem [resolvable:$true] %s780_s12 }
   0xe   :  { %v81_v40 = vsel %vm68_vm0, %v64_v36, 0.0  ;;  %v126_v41 = vsel %vm68_vm0, %v106_v37, 0.0  ;;  %v267_v48 = vunpack.c.l.s4 %v900_v47  ;;  %v66_v51 = vmul.f32 %v802_v8, %v42_v44  ;;  %s790_s14 = sshll.u32 %s903_s4, 4  ;;  %s851_s16 = scalar_lea.vmem %s781_s12, 16  ;;  %s1303_s14 = int_to_ptr.vmem [resolvable:$true] %s790_s14 }
   0xf   :  { %118 = vadd.xlane.f32.xlu1 %v117_v23  ;;  %v84_v49 = vsel %vm68_vm0, %v65_v42, 0.0  ;;  %v129_v50 = vsel %vm68_vm0, %v107_v43, 0.0  ;;  %v67_v52 = vmul.f32 %v802_v8, %v43_v45  ;;  %v1017_v55 = vshrl.u32 %v140_v46, 7  ;;  %p852_p0 = scmp.ne.s32.totalorder %s781_s12, %s851_s16  ;;  %s855_s3 = scalar_lea.vmem %s781_s12, 32 }
  0x10   :  { %73 = vadd.xlane.f32.xlu0 %v72_v22  ;;  %v87_v53 = vsel %vm68_vm0, %v66_v51, 0.0  ;;  %v268_v56 = vunpack.c.0.s8 %v267_v48  ;;  %v265_v3 = vcombine.high %v1023_v58, %v1023_v58  ;;  %v1045_v31 = vand.u32 127, %v140_v46  ;;  %p856_p1 = scmp.lt.s32.totalorder %s781_s12, %s781_s12  ;;  %p857_p2 = scmp.lt.s32.totalorder %s855_s3, %s851_s16 }
  0x11   :  { %v90_v54 = vsel %vm68_vm0, %v67_v52, 0.0  ;;  %v1027_v61 = vsub.s32 0, %v1017_v55  ;;  %vm400_vm5 = vcmask 64512  }
  0x12   :  { %v271_v57 = vsub.s32 %v268_v56, %v1017_v55  ;;  %vm1058_vm1 = vcmp.gt.s32.totalorder %v1045_v31, %v1017_v55  ;;  %p858_p3 = por %p857_p2, %p856_p1 }
  0x13   :  { %121 = vadd.xlane.f32.xlu1 %v120_v29 }
  0x14   :  { %76 = vadd.xlane.f32.xlu0 %v75_v28  ;;  %v272_v59 = vrot.slane %v1023_v58, %v271_v57  ;;  %v279_v7 = vrot.slane %v265_v3, %v271_v57  ;;  %p859_p4 = pnand %p858_p3, %p852_p0 }
  0x16   :  { %v288_v60 = vrot.slane %v272_v59, %v271_v57  ;;  %v280_v62 = vcombine.high %v272_v59, %v272_v59  ;;  %v295_v9 = vrot.slane %v279_v7, %v271_v57  ;;  %v281_v10 = vcombine.high %v279_v7, %v279_v7 }
  0x17   :  { %124 = vadd.xlane.f32.xlu1 %v123_v35  ;;  %v651_v35 = vadd.s32 1, %v1017_v55 }
  0x18   :  { %79 = vadd.xlane.f32.xlu0 %v78_v34  ;;  %v318_v63 = vrot.slane %v288_v60, %v1027_v61  ;;  %v302_v0 = vrot.slane %v280_v62, %v271_v57  ;;  %v310_v2 = vcombine.high %v288_v60, %v288_v60  ;;  %v334_v11 = vrot.slane %v295_v9, %v1027_v61 }
  0x19   :  { %v309_v12 = vrot.slane %v281_v10, %v271_v57  ;;  %v311_v14 = vcombine.high %v295_v9, %v295_v9  ;;  %v1051_v34 = vsub.s32 %v1045_v31, %v1017_v55  ;;  %vm1072_vm4 = vcmp.eq.s32.totalorder %v1045_v31, %v651_v35 }
  0x1a   :  { %v322_v1 = vrot.slane %v302_v0, %v1027_v61  ;;  %v326_v5 = vrot.slane %v310_v2, %v1027_v61  ;;  %v312_v6 = vcombine.high %v302_v0, %v302_v0 }
  0x1b   :  { %127 = vadd.xlane.f32.xlu1 %v126_v41  ;;  %v338_v13 = vrot.slane %v309_v12, %v1027_v61  ;;  %v342_v15 = vrot.slane %v311_v14, %v1027_v61  ;;  %v313_v16 = vcombine.high %v309_v12, %v309_v12 }
  0x1c   :  { %82 = vadd.xlane.f32.xlu0 %v81_v40  ;;  %v330_v8 = vrot.slane %v312_v6, %v1027_v61 }
  0x1d   :  { %v346_v17 = vrot.slane %v313_v16, %v1027_v61 }
  0x1f   :  { %130 = vadd.xlane.f32.xlu1 %v129_v50 }
  0x20   :  { %85 = vadd.xlane.f32.xlu0 %v84_v49 }
  0x23   :  { %91 = vadd.xlane.f32.xlu1 %v90_v54 }
  0x24   :  { %88 = vadd.xlane.f32.xlu0 %v87_v53 }
  0x34   :  { %348 = vperm.xlu1 %817, %v318_v63  }
  0x38   :  { %351 = vperm.xlu1 %817, %v322_v1  }
  0x3a   :  { %252 = vperm.xlu0 %816, %v804_v4  }
  0x3c   :  { %354 = vperm.xlu1 %817, %v326_v5  }
  0x40   :  { %357 = vperm.xlu1 %817, %v330_v8  }
  0x44   :  { %360 = vperm.xlu1 %817, %v334_v11  }
  0x48   :  { %363 = vperm.xlu1 %817, %v338_v13  }
  0x4c   :  { %366 = vperm.xlu1 %817, %v342_v15  }
  0x50   :  { %369 = vperm.xlu1 %817, %v346_v17  }
  0x94   :  { %v116_v18 = vpop.xlane.xlu1 %115 }
  0x95   :  { %v110_v19 = vpop.xlane.xlu0 %109  ;;  %v153_v47 = vrot.slane %v116_v18, %v1051_v34 }
  0x96   :  { %v145_v36 = vrot.slane %v110_v19, %v1051_v34 }
  0x98   :  { %v71_v21 = vpop.xlane.xlu1 %70 }
  0x99   :  { %v113_v20 = vpop.xlane.xlu0 %112  ;;  %v237_v43 = vadd.f32 %v145_v36, %v71_v21 }
  0x9a   :  { %v149_v37 = vrot.slane %v113_v20, %v1051_v34 }
  0x9c   :  { %v119_v23 = vpop.xlane.xlu1 %118 }
  0x9d   :  { %v74_v22 = vpop.xlane.xlu0 %73  ;;  %v157_v60 = vrot.slane %v119_v23, %v1051_v34 }
  0x9e   :  { %v238_v44 = vadd.f32 %v149_v37, %v74_v22 }
  0xa0   :  { %v122_v25 = vpop.xlane.xlu1 %121 }
  0xa1   :  { %v77_v24 = vpop.xlane.xlu0 %76  ;;  %v161_v4 = vrot.slane %v122_v25, %v1051_v34 }
  0xa2   :  { %v239_v50 = vadd.f32 %v153_v47, %v77_v24 }
  0xa4   :  { %v1039_v27 = vpop.xlane.xlu1 %124 }
  0xa5   :  { %v80_v26 = vpop.xlane.xlu0 %79  ;;  %v165_v11 = vrot.slane %v1039_v27, %v1051_v34 }
  0xa6   :  { %v240_v63 = vadd.f32 %v157_v60, %v80_v26 }
  0xa8   :  { %v1041_v29 = vpop.xlane.xlu1 %127 }
  0xa9   :  { %v83_v28 = vpop.xlane.xlu0 %82  ;;  %v169_v18 = vrot.slane %v1041_v29, %v1051_v34 }
  0xaa   :  { %v241_v6 = vadd.f32 %v161_v4, %v83_v28 }
  0xac   :  { %v1043_v30 = vpop.xlane.xlu1 %130 }
  0xad   :  { %v86_v32 = vpop.xlane.xlu0 %85  ;;  %v173_v25 = vrot.slane %v1043_v30, %v1051_v34 }
  0xae   :  { %v242_v13 = vadd.f32 %v165_v11, %v86_v32 }
  0xb0   :  { %v1047_v33 = vpop.xlane.xlu1 %91 }
  0xb1   :  { %v1062_v39 = vpop.xlane.xlu0 %88  ;;  %v244_v27 = vadd.f32 %v173_v25, %v1047_v33  ;;  %v525_v25 = vsub.s32 7, %v1017_v55 }
  0xb2   :  { %v243_v20 = vadd.f32 %v169_v18, %v1062_v39  ;;  %v805_v39 = vadd.s32 4294967295, %v1023_v58 }
  0xb4   :  { %v349_v40 = vpop.permute.xlu1 %348 }
  0xb5   :  { %vm371_vm2 = vcmp.lt.s32.totalorder %v1045_v31, %v349_v40 }
  0xb6   :  { %vm1067_vm3 = vmand %vm1058_vm1, %vm371_vm2 }
  0xb7   :  { %vm653_vm7 = vmand %vm1072_vm4, %vm1067_vm3 }
  0xb8   :  { %v352_v46 = vpop.permute.xlu1 %351 }
  0xb9   :  { %v1076_v45 = vpop.permute.xlu0 %252  ;;  %vm372_vm6 = vcmp.lt.s32.totalorder %v1045_v31, %v352_v46 }
  0xba   :  { %v255_v48 = vadd.f32 %v1076_v45, %v237_v43  ;;  %v256_v49 = vadd.f32 %v1076_v45, %v238_v44  ;;  %vm380_vm8 = vmand %vm1058_vm1, %vm372_vm6  ;;  %v257_v62 = vadd.f32 %v1076_v45, %v239_v50  ;;  %v258_v5 = vadd.f32 %v1076_v45, %v240_v63 }
  0xbb   :  { %vm654_vm9 = vmand %vm1072_vm4, %vm380_vm8  ;;  %v259_v12 = vadd.f32 %v1076_v45, %v241_v6  ;;  %v260_v19 = vadd.f32 %v1076_v45, %v242_v13  ;;  %v261_v26 = vadd.f32 %v1076_v45, %v243_v20  ;;  %v262_v35 = vadd.f32 %v1076_v45, %v244_v27 }
  0xbc   :  { %v1090_v51 = vsel %vm1067_vm3, %v255_v48, -1e+30  ;;  %v1092_v52 = vsel %vm380_vm8, %v256_v49, -1e+30  ;;  %v1094_v53 = vsel %vm653_vm7, %v255_v48, 0.0  ;;  %v355_v54 = vpop.permute.xlu1 %354  ;;  %v1102_v59 = vsel %vm654_vm9, %v256_v49, 0.0 }
  0xbd   :  { %v401_v56 = vsel %vm400_vm5, %v1090_v51, -inf  ;;  %v404_v57 = vsel %vm400_vm5, %v1092_v52, -inf  ;;  %vm373_vm10 = vcmp.lt.s32.totalorder %v1045_v31, %v355_v54  ;;  %v490_v13 = vsub.s32 2, %v1017_v55 }
  0xbe   :  { %402 = vmax.xlane.f32.xlu0 %v401_v56  ;;  %405 = vmax.xlane.f32.xlu1 %v404_v57  ;;  %vm381_vm11 = vmand %vm1058_vm1, %vm373_vm10  ;;  %v511_v20 = vsub.s32 5, %v1017_v55 }
  0xbf   :  { %v1109_v0 = vsel %vm381_vm11, %v257_v62, -1e+30  ;;  %vm655_vm12 = vmand %vm1072_vm4, %vm381_vm11 }
  0xc0   :  { %v358_v1 = vpop.permute.xlu1 %357  ;;  %v407_v2 = vsel %vm400_vm5, %v1109_v0, -inf  ;;  %v1115_v3 = vsel %vm655_vm12, %v257_v62, 0.0 }
  0xc1   :  { %vm374_vm13 = vcmp.lt.s32.totalorder %v1045_v31, %v358_v1 }
  0xc2   :  { %408 = vmax.xlane.f32.xlu0 %v407_v2  ;;  %vm382_vm14 = vmand %vm1058_vm1, %vm374_vm13 }
  0xc3   :  { %v1122_v7 = vsel %vm382_vm14, %v258_v5, -1e+30  ;;  %vm656_vm15 = vmand %vm1072_vm4, %vm382_vm14 }
  0xc4   :  { %v361_v8 = vpop.permute.xlu1 %360  ;;  %v410_v9 = vsel %vm400_vm5, %v1122_v7, -inf  ;;  %v1128_v10 = vsel %vm656_vm15, %v258_v5, 0.0  ;;  %vm177_vm15 = vcmask 1043459   ;;  %v483_v5 = vsub.s32 1, %v1017_v55 }
  0xc5   :  { %vm375_vm0 = vcmp.lt.s32.totalorder %v1045_v31, %v361_v8 }
  0xc6   :  { %411 = vmax.xlane.f32.xlu0 %v410_v9  ;;  %vm383_vm2 = vmand %vm1058_vm1, %vm375_vm0  ;;  %vm179_vm0 = vcmask 1044484  }
  0xc7   :  { %v1136_v14 = vsel %vm383_vm2, %v259_v12, -1e+30  ;;  %vm657_vm3 = vmand %vm1072_vm4, %vm383_vm2  ;;  %vm181_vm2 = vcmask 1045509  }
  0xc8   :  { %v364_v15 = vpop.permute.xlu1 %363  ;;  %v413_v16 = vsel %vm400_vm5, %v1136_v14, -inf  ;;  %v1142_v17 = vsel %vm657_vm3, %v259_v12, 0.0  ;;  %vm183_vm3 = vcmask 1046534  }
  0xc9   :  { %vm376_vm6 = vcmp.lt.s32.totalorder %v1045_v31, %v364_v15  ;;  %414 = vmax.xlane.f32.xlu1 %v413_v16  ;;  %v497_v15 = vsub.s32 3, %v1017_v55 }
  0xca   :  { %vm384_vm7 = vmand %vm1058_vm1, %vm376_vm6  ;;  %vm185_vm6 = vcmask 1047559  }
  0xcb   :  { %v1151_v21 = vsel %vm384_vm7, %v260_v19, -1e+30  ;;  %vm658_vm8 = vmand %vm1072_vm4, %vm384_vm7 }
  0xcc   :  { %v367_v22 = vpop.permute.xlu1 %366  ;;  %v416_v23 = vsel %vm400_vm5, %v1151_v21, -inf  ;;  %v1157_v24 = vsel %vm658_vm8, %v260_v19, 0.0  ;;  %v504_v19 = vsub.s32 4, %v1017_v55  ;;  %vm33_vm8 = vcmask 0  }
  0xcd   :  { %vm377_vm9 = vcmp.lt.s32.totalorder %v1045_v31, %v367_v22  ;;  %417 = vmax.xlane.f32.xlu0 %v416_v23  ;;  %v518_v23 = vsub.s32 6, %v1017_v55 }
  0xce   :  { %vm385_vm10 = vmand %vm1058_vm1, %vm377_vm9 }
  0xcf   :  { %v1166_v28 = vsel %vm385_vm10, %v261_v26, -1e+30  ;;  %vm659_vm11 = vmand %vm1072_vm4, %vm385_vm10 }
  0xd0   :  { %v370_v29 = vpop.permute.xlu1 %369  ;;  %v419_v32 = vsel %vm400_vm5, %v1166_v28, -inf  ;;  %v1172_v30 = vsel %vm659_vm11, %v261_v26, 0.0 }
  0xd1   :  { %vm378_vm12 = vcmp.lt.s32.totalorder %v1045_v31, %v370_v29  ;;  %420 = vmax.xlane.f32.xlu1 %v419_v32  ;;  %v901_v29 = vmov 0.0  }
  0xd2   :  { %vm386_vm13 = vmand %vm1058_vm1, %vm378_vm12  ;;  %vm174_vm1 = vcmask 1041409   ;;  %34 = vst.msk [vmem:[#allocation3] sm:$0x1] %vm33_vm8, %v901_v29 }
  0xd3   :  { %v1178_v33 = vsel %vm386_vm13, %v262_v35, -1e+30  ;;  %vm660_vm14 = vmand %vm1072_vm4, %vm386_vm13  ;;  %vm175_vm4 = vcmask 1042434   ;;  %35 = vst.msk [vmem:[#allocation5] sm:$0x1] %vm33_vm8, %v901_v29 }
  0xd4   :  { %v422_v36 = vsel %vm400_vm5, %v1178_v33, -inf  ;;  %v1184_v37 = vsel %vm660_vm14, %v262_v35, 0.0 }
  0xd5   :  { %423 = vmax.xlane.f32.xlu0 %v422_v36 }
  0xe2   :  { %389 = vperm.xlu1 %817, %v805_v39  }
 0x14b   :  { %v403_v40 = vpop.xlane.xlu0 %402  ;;  %v406_v43 = vpop.xlane.xlu1 %405 }
 0x14c   :  { %v436_v45 = vrot.slane %v403_v40, %v1051_v34  ;;  %v440_v46 = vrot.slane %v406_v43, %v1051_v34 }
 0x14e   :  { %v465_v50 = vsel %vm174_vm1, %v440_v46, %v436_v45 }
 0x14f   :  { %v409_v41 = vpop.xlane.xlu0 %408 }
 0x150   :  { %v444_v42 = vrot.slane %v409_v41, %v1051_v34 }
 0x152   :  { %v466_v56 = vsel %vm175_vm4, %v444_v42, %v465_v50 }
 0x153   :  { %v412_v44 = vpop.xlane.xlu0 %411 }
 0x154   :  { %v448_v48 = vrot.slane %v412_v44, %v1051_v34 }
 0x156   :  { %v415_v38 = vpop.xlane.xlu1 %414  ;;  %v467_v60 = vsel %vm177_vm15, %v448_v48, %v466_v56 }
 0x157   :  { %v452_v58 = vrot.slane %v415_v38, %v1051_v34 }
 0x159   :  { %v468_v62 = vsel %vm179_vm0, %v452_v58, %v467_v60 }
 0x15a   :  { %v418_v47 = vpop.xlane.xlu0 %417 }
 0x15b   :  { %v456_v54 = vrot.slane %v418_v47, %v1051_v34 }
 0x15d   :  { %v469_v2 = vsel %vm181_vm2, %v456_v54, %v468_v62 }
 0x15e   :  { %v421_v49 = vpop.xlane.xlu1 %420 }
 0x15f   :  { %v460_v57 = vrot.slane %v421_v49, %v1051_v34 }
 0x161   :  { %v470_v6 = vsel %vm183_vm3, %v460_v57, %v469_v2 }
 0x162   :  { %v424_v63 = vpop.xlane.xlu0 %423  ;;  %v1198_v1 = vpop.permute.xlu1 %389 }
 0x163   :  { %v464_v4 = vrot.slane %v424_v63, %v1051_v34  ;;  %vm391_vm7 = vcmp.lt.s32.totalorder %v1045_v31, %v1198_v1  ;;  %v743_v31 = vld [vmem:[#allocation3] sm:$0x1]  ;;  %v758_v1 = vld [vmem:[#allocation5] sm:$0x1] }
 0x165   :  { %v471_v8 = vsel %vm185_vm6, %v464_v4, %v470_v6 }
 0x166   :  { %v1210_v9 = vsel %vm391_vm7, %v471_v8, 0.0 }
 0x167   :  { %v484_v11 = vrot.slane %v1210_v9, %v483_v5  ;;  %v477_v12 = vrot.slane %v1210_v9, %v1027_v61  ;;  %v491_v16 = vrot.slane %v1210_v9, %v490_v13  ;;  %v498_v18 = vrot.slane %v1210_v9, %v497_v15 }
 0x168   :  { %v505_v22 = vrot.slane %v1210_v9, %v504_v19  ;;  %v512_v61 = vrot.slane %v1210_v9, %v511_v20  ;;  %v519_v26 = vrot.slane %v1210_v9, %v518_v23  ;;  %v526_v27 = vrot.slane %v1210_v9, %v525_v25 }
 0x169   :  { %486 = vbcast.lane.b32.xlu1 %v484_v11, 256  ;;  %479 = vbcast.lane.b32.xlu0 %v477_v12, 256  ;;  %v669_v15 = vsel %vm400_vm5, %v1094_v53, 0.0  ;;  %v678_v19 = vsel %vm400_vm5, %v1128_v10, 0.0  ;;  %v681_v20 = vsel %vm400_vm5, %v1142_v17, 0.0  ;;  %v684_v53 = vsel %vm400_vm5, %v1157_v24, 0.0 }
 0x16a   :  { %v806_v10 = vsel %vm391_vm7, 1.0, %v901_v29 }
 0x16b   :  { %v761_v17 = vsel %vm400_vm5, %v806_v10, 0.0 }
 0x16d   :  { %493 = vbcast.lane.b32.xlu1 %v491_v16, 256  ;;  %500 = vbcast.lane.b32.xlu0 %v498_v18, 256  ;;  %v672_v16 = vsel %vm400_vm5, %v1102_v59, 0.0  ;;  %v675_v18 = vsel %vm400_vm5, %v1115_v3, 0.0  ;;  %v687_v59 = vsel %vm400_vm5, %v1172_v30, 0.0  ;;  %v690_v3 = vsel %vm400_vm5, %v1184_v37, 0.0 }
 0x171   :  { %507 = vbcast.lane.b32.xlu1 %v505_v22, 256  ;;  %514 = vbcast.lane.b32.xlu0 %v512_v61, 256 }
 0x175   :  { %521 = vbcast.lane.b32.xlu1 %v519_v26, 256  ;;  %528 = vbcast.lane.b32.xlu0 %v526_v27, 256 }
 0x1db   :  { %v487_v32 = vpop.permute.xlu1 %486  ;;  %v480_v35 = vpop.permute.xlu0 %479 }
 0x1dc   :  { %v531_v55 = vsub.f32 %v1092_v52, %v487_v32  ;;  %v530_v36 = vsub.f32 %v1090_v51, %v480_v35 }
 0x1de   :  { %v540_v39 = vmul.f32 1.442695, %v531_v55  ;;  %v538_v40 = vmul.f32 1.442695, %v530_v36 }
 0x1df   :  { %v494_v41 = vpop.permute.xlu1 %493  ;;  %v501_v43 = vpop.permute.xlu0 %500 }
 0x1e0   :  { %819 = vpow2.f32 %v540_v39  ;;  %v532_v44 = vsub.f32 %v1109_v0, %v494_v41  ;;  %v533_v38 = vsub.f32 %v1122_v7, %v501_v43 }
 0x1e1   :  { %821 = vpow2.f32 %v538_v40 }
 0x1e2   :  { %v542_v45 = vmul.f32 1.442695, %v532_v44  ;;  %v544_v46 = vmul.f32 1.442695, %v533_v38 }
 0x1e3   :  { %v508_v42 = vpop.permute.xlu1 %507  ;;  %v515_v47 = vpop.permute.xlu0 %514 }
 0x1e4   :  { %823 = vpow2.f32 %v542_v45  ;;  %v534_v48 = vsub.f32 %v1136_v14, %v508_v42  ;;  %v535_v52 = vsub.f32 %v1151_v21, %v515_v47 }
 0x1e5   :  { %825 = vpow2.f32 %v544_v46 }
 0x1e6   :  { %v546_v51 = vmul.f32 1.442695, %v534_v48  ;;  %v548_v58 = vmul.f32 1.442695, %v535_v52 }
 0x1e7   :  { %v522_v49 = vpop.permute.xlu1 %521  ;;  %v529_v50 = vpop.permute.xlu0 %528 }
 0x1e8   :  { %827 = vpow2.f32 %v546_v51  ;;  %v536_v0 = vsub.f32 %v1166_v28, %v522_v49  ;;  %v537_v7 = vsub.f32 %v1178_v33, %v529_v50 }
 0x1e9   :  { %829 = vpow2.f32 %v548_v58 }
 0x1ea   :  { %v820_v54 = vpop.eup %819  ;;  %v550_v56 = vmul.f32 1.442695, %v536_v0  ;;  %v552_v57 = vmul.f32 1.442695, %v537_v7 }
 0x1eb   :  { %v822_v60 = vpop.eup %821  ;;  %v557_v62 = vsel %vm400_vm5, %v820_v54, 0.0 }
 0x1ec   :  { %831 = vpow2.f32 %v550_v56  ;;  %558 = vadd.xlane.f32.xlu0 %v557_v62  ;;  %v554_v14 = vsel %vm400_vm5, %v822_v60, 0.0 }
 0x1ed   :  { %833 = vpow2.f32 %v552_v57  ;;  %555 = vadd.xlane.f32.xlu1 %v554_v14 }
 0x1ee   :  { %v824_v21 = vpop.eup %823 }
 0x1ef   :  { %v826_v63 = vpop.eup %825  ;;  %v560_v2 = vsel %vm400_vm5, %v824_v21, 0.0 }
 0x1f0   :  { %561 = vadd.xlane.f32.xlu0 %v560_v2  ;;  %v563_v28 = vsel %vm400_vm5, %v826_v63, 0.0 }
 0x1f1   :  { %564 = vadd.xlane.f32.xlu1 %v563_v28 }
 0x1f2   :  { %v828_v33 = vpop.eup %827 }
 0x1f3   :  { %v830_v4 = vpop.eup %829  ;;  %v566_v5 = vsel %vm400_vm5, %v828_v33, 0.0 }
 0x1f4   :  { %567 = vadd.xlane.f32.xlu0 %v566_v5  ;;  %v569_v6 = vsel %vm400_vm5, %v830_v4, 0.0 }
 0x1f5   :  { %570 = vadd.xlane.f32.xlu1 %v569_v6 }
 0x1f6   :  { %v832_v8 = vpop.eup %831 }
 0x1f7   :  { %v834_v11 = vpop.eup %833  ;;  %v572_v12 = vsel %vm400_vm5, %v832_v8, 0.0 }
 0x1f8   :  { %573 = vadd.xlane.f32.xlu0 %v572_v12  ;;  %v575_v13 = vsel %vm400_vm5, %v834_v11, 0.0 }
 0x1f9   :  { %576 = vadd.xlane.f32.xlu1 %v575_v13 }
 0x1fc   :  { %670 = vadd.xlane.f32.xlu0 %v669_v15 }
 0x1fd   :  { %673 = vadd.xlane.f32.xlu1 %v672_v16 }
 0x200   :  { %676 = vadd.xlane.f32.xlu0 %v675_v18 }
 0x201   :  { %679 = vadd.xlane.f32.xlu1 %v678_v19 }
 0x204   :  { %682 = vadd.xlane.f32.xlu0 %v681_v20 }
 0x205   :  { %685 = vadd.xlane.f32.xlu1 %v684_v53 }
 0x208   :  { %688 = vadd.xlane.f32.xlu0 %v687_v59 }
 0x209   :  { %691 = vadd.xlane.f32.xlu1 %v690_v3 }
 0x20d   :  { %762 = vadd.xlane.f32.xlu1 %v761_v17 }
 0x279   :  { %v559_v22 = vpop.xlane.xlu0 %558 }
 0x27a   :  { %v556_v61 = vpop.xlane.xlu1 %555  ;;  %v579_v24 = vmax.f32 %v559_v22, 1e-30 }
 0x27b   :  { %v578_v23 = vmax.f32 %v556_v61, 1e-30 }
 0x27c   :  { %835 = vlog2.f32 %v579_v24 }
 0x27d   :  { %837 = vlog2.f32 %v578_v23  ;;  %v562_v30 = vpop.xlane.xlu0 %561 }
 0x27e   :  { %v565_v25 = vpop.xlane.xlu1 %564  ;;  %v580_v26 = vmax.f32 %v562_v30, 1e-30 }
 0x27f   :  { %v581_v27 = vmax.f32 %v565_v25, 1e-30 }
 0x280   :  { %839 = vlog2.f32 %v580_v26 }
 0x281   :  { %841 = vlog2.f32 %v581_v27  ;;  %v568_v37 = vpop.xlane.xlu0 %567 }
 0x282   :  { %v571_v32 = vpop.xlane.xlu1 %570  ;;  %v582_v35 = vmax.f32 %v568_v37, 1e-30 }
 0x283   :  { %v583_v55 = vmax.f32 %v571_v32, 1e-30 }
 0x284   :  { %843 = vlog2.f32 %v582_v35 }
 0x285   :  { %845 = vlog2.f32 %v583_v55  ;;  %v574_v29 = vpop.xlane.xlu0 %573 }
 0x286   :  { %v836_v36 = vpop.eup %835  ;;  %v577_v39 = vpop.xlane.xlu1 %576  ;;  %v584_v40 = vmax.f32 %v574_v29, 1e-30 }
 0x287   :  { %v838_v41 = vpop.eup %837  ;;  %v589_v43 = vmul.f32 0.6931472, %v836_v36  ;;  %v585_v44 = vmax.f32 %v577_v39, 1e-30 }
 0x288   :  { %v587_v38 = vmul.f32 0.6931472, %v838_v41  ;;  %847 = vlog2.f32 %v584_v40 }
 0x289   :  { %849 = vlog2.f32 %v585_v44  ;;  %v671_v45 = vpop.xlane.xlu0 %670  ;;  %v617_v47 = vrot.slane %v589_v43, %v1051_v34 }
 0x28a   :  { %v840_v46 = vpop.eup %839  ;;  %v613_v42 = vrot.slane %v587_v38, %v1051_v34  ;;  %v674_v48 = vpop.xlane.xlu1 %673  ;;  %v704_v49 = vrot.slane %v671_v45, %v1051_v34 }
 0x28b   :  { %v842_v52 = vpop.eup %841  ;;  %v591_v51 = vmul.f32 0.6931472, %v840_v46  ;;  %v708_v58 = vrot.slane %v674_v48, %v1051_v34 }
 0x28c   :  { %v593_v50 = vmul.f32 0.6931472, %v842_v52  ;;  %v642_v56 = vsel %vm174_vm1, %v617_v47, %v613_v42 }
 0x28d   :  { %v621_v0 = vrot.slane %v591_v51, %v1051_v34  ;;  %v677_v7 = vpop.xlane.xlu0 %676  ;;  %v733_v2 = vsel %vm174_vm1, %v708_v58, %v704_v49 }
 0x28e   :  { %v844_v54 = vpop.eup %843  ;;  %v625_v57 = vrot.slane %v593_v50, %v1051_v34  ;;  %v680_v60 = vpop.xlane.xlu1 %679  ;;  %v712_v62 = vrot.slane %v677_v7, %v1051_v34 }
 0x28f   :  { %v846_v14 = vpop.eup %845  ;;  %v643_v21 = vsel %vm175_vm4, %v621_v0, %v642_v56  ;;  %v595_v63 = vmul.f32 0.6931472, %v844_v54  ;;  %v716_v28 = vrot.slane %v680_v60, %v1051_v34 }
 0x290   :  { %v597_v33 = vmul.f32 0.6931472, %v846_v14  ;;  %v734_v4 = vsel %vm175_vm4, %v712_v62, %v733_v2  ;;  %v644_v12 = vsel %vm177_vm15, %v625_v57, %v643_v21 }
 0x291   :  { %v629_v5 = vrot.slane %v595_v63, %v1051_v34  ;;  %v683_v6 = vpop.xlane.xlu0 %682  ;;  %v735_v53 = vsel %vm177_vm15, %v716_v28, %v734_v4 }
 0x292   :  { %v848_v8 = vpop.eup %847  ;;  %v633_v11 = vrot.slane %v597_v33, %v1051_v34  ;;  %v686_v13 = vpop.xlane.xlu1 %685  ;;  %v720_v15 = vrot.slane %v683_v6, %v1051_v34 }
 0x293   :  { %v850_v16 = vpop.eup %849  ;;  %v645_v18 = vsel %vm179_vm0, %v629_v5, %v644_v12  ;;  %v599_v19 = vmul.f32 0.6931472, %v848_v8  ;;  %v724_v20 = vrot.slane %v686_v13, %v1051_v34 }
 0x294   :  { %v601_v59 = vmul.f32 0.6931472, %v850_v16  ;;  %v736_v3 = vsel %vm179_vm0, %v720_v15, %v735_v53  ;;  %v646_v23 = vsel %vm181_vm2, %v633_v11, %v645_v18 }
 0x295   :  { %v637_v10 = vrot.slane %v599_v19, %v1051_v34  ;;  %v689_v17 = vpop.xlane.xlu0 %688  ;;  %v737_v25 = vsel %vm181_vm2, %v724_v20, %v736_v3 }
 0x296   :  { %v641_v22 = vrot.slane %v601_v59, %v1051_v34  ;;  %v692_v61 = vpop.xlane.xlu1 %691  ;;  %v728_v24 = vrot.slane %v689_v17, %v1051_v34 }
 0x297   :  { %v732_v30 = vrot.slane %v692_v61, %v1051_v34  ;;  %v647_v26 = vsel %vm183_vm3, %v637_v10, %v646_v23 }
 0x298   :  { %v738_v27 = vsel %vm183_vm3, %v728_v24, %v737_v25  ;;  %v648_v37 = vsel %vm185_vm6, %v641_v22, %v647_v26 }
 0x299   :  { %v650_v32 = vadd.f32 %v648_v37, %v1210_v9  ;;  %v739_v35 = vsel %vm185_vm6, %v732_v30, %v738_v27 }
 0x29a   :  { %v763_v34 = vpop.xlane.xlu1 %762 }
 0x29b   :  { %v741_v55 = vsub.f32 %v650_v32, %v739_v35  ;;  %v764_v39 = vrot.slane %v763_v34, 4 }
 0x29d   :  { %v742_v29 = vsel %vm391_vm7, %v741_v55, 0.0  ;;  %v765_v40 = vadd.f32 %v764_v39, %v763_v34 }
 0x29e   :  { %v744_v36 = vsel %vm400_vm5, %v742_v29, 0.0 }
 0x29f   :  { %745 = vadd.xlane.f32.xlu0 %v744_v36  ;;  %v766_v41 = vrot.slane %v765_v40, 2 }
 0x2a1   :  { %v767_v45 = vadd.f32 %v766_v41, %v765_v40 }
 0x2a3   :  { %v768_v42 = vrot.slane %v767_v45, 1 }
 0x2a5   :  { %v769_v52 = vadd.f32 %v768_v42, %v767_v45 }
 0x32c   :  { %v746_v43 = vpop.xlane.xlu0 %745 }
 0x32d   :  { %v747_v44 = vrot.slane %v746_v43, 4 }
 0x32f   :  { %v748_v38 = vadd.f32 %v747_v44, %v746_v43 }
 0x331   :  { %v749_v46 = vrot.slane %v748_v38, 2 }
 0x333   :  { %v750_v9 = vadd.f32 %v749_v46, %v748_v38 }
 0x335   :  { %v751_v47 = vrot.slane %v750_v9, 1 }
 0x337   :  { %v752_v48 = vadd.f32 %v751_v47, %v750_v9 }
 0x339   :  { %807 = vpush %v752_v48 }
 0x33a   :  { %809 = vpush %v769_v52 }
 0x36a   :  { %s808_s13 = spop %807 }
 0x36b   :  { %v754_v51 = vstv %s808_s13  ;;  %s810_s15 = spop %809 }
 0x36c   :  { %v755_v58 = vadd.f32 %v754_v51, %v743_v31  ;;  %v771_v49 = vstv %s810_s15 }
 0x36d   :  { %v772_v50 = vadd.f32 %v771_v49, %v758_v1 }
 0x36e   :  { %757 = vst.msk [vmem:[#allocation3] sm:$0x1] %vm33_vm8, %v755_v58 }
 0x36f   :  { %773 = vst.msk [vmem:[#allocation5] sm:$0x1] %vm33_vm8, %v772_v50 }
 0x370   :  { %862 = shalt.err (!%p859_p4)
}
 0x371   :  { %s863_s19 = scalar_lea.hbm %s1343_s6, 16 }
 0x372   :  { %p864_p5 = scmp.ne.s32.totalorder %s1343_s6, %s863_s19  ;;  %p867_p6 = scmp.lt.u32.totalorder %s863_s19, %s1343_s6 }
 0x374   :  { %p869_p7 = pnand %p867_p6, %p864_p5 }
 0x376   :  { %872 = shalt.err (!%p869_p7)
}
 0x377   :  { %783 = dma.vmem_to_hbm [thread:$0]  %s781_s12, 16, %s1343_s6, [#allocation4]  }
 0x378   :  { %s873_s26 = scalar_lea.vmem %s1303_s14, 16  ;;  %s877_s27 = scalar_lea.vmem %s1303_s14, 32 }
 0x379   :  { %p874_p8 = scmp.ne.s32.totalorder %s1303_s14, %s873_s26  ;;  %p878_p9 = scmp.lt.s32.totalorder %s1303_s14, %s1303_s14 }
 0x37a   :  { %p879_p10 = scmp.lt.s32.totalorder %s877_s27, %s873_s26 }
 0x37c   :  { %p880_p11 = por %p879_p10, %p878_p9 }
 0x37e   :  { %p881_p12 = pnand %p880_p11, %p874_p8 }
 0x380   :  { %884 = shalt.err (!%p881_p12)
}
 0x381   :  { %s885_s30 = scalar_lea.hbm %s1344_s7, 16 }
 0x382   :  { %p886_p13 = scmp.ne.s32.totalorder %s1344_s7, %s885_s30  ;;  %p889_p0 = scmp.lt.u32.totalorder %s885_s30, %s1344_s7 }
 0x384   :  { %p891_p1 = pnand %p889_p0, %p886_p13 }
 0x386   :  { %894 = shalt.err (!%p891_p1)
}
 0x387   :  { %793 = dma.vmem_to_hbm [thread:$0]  %s1303_s14, 16, %s1344_s7, [#allocation6]  }
 0x388   :  { %895 = dma.done.wait [#allocation4], 16  }
 0x389   :  { %896 = vsyncadd [#allocation4], 4294967280 }
 0x38a   :  { %897 = dma.done.wait [#allocation6], 16  }
 0x38b   :  { %898 = vsyncadd [#allocation6], 4294967280 }
 0x38c   :  { %800 = vsyncpa [#allocation4], 1 }
 0x38d   :  { %801 = vsyncpa [#allocation6], 1 }

</bundles_post_ra>
